<compile_context>
chip_gen: v6e
topology: v6e:2x2x1
jax: 0.10.0
libtpu: 0.0.40
codegen_flags: <defaults>
</compile_context>

<pallas_src>
import functools

import jax
import jax.numpy as jnp
from jax.experimental import pallas as pl
from jax.experimental.pallas import tpu as pltpu


def _round_up(x, m):
    return ((x + m - 1) // m) * m


def _pick_tile(m_rows, requested):
    """Rows per grid step.

    Multiple of 128 (lane width / side-input lane constraint), at least ~8 grid steps for
    large problems (keeps both v7x TensorCores busy on the 'parallel' axis), and capped so
    the lane-padded (tm, C->128) VMEM block buffers stay within the 48 MiB budget.
    """
    if m_rows <= 128:
        return m_rows                          # single block; block dims == full array dims
    tm = max(1024, _round_up(pl.cdiv(m_rows, 8), 128))          # >= 8 steps when M is large
    tm = min(tm, _round_up(requested, 128), (m_rows // 128) * 128)
    return tm


def _ce_rows_kernel(pred_ref, tgt_ref, w_ref, loss_ref, *, rows_total, tile_rows):
    """One grid step processes tile_rows rows.

    pred_ref: (TM, C)  logits in natural row-major layout (one contiguous DMA per step)
    tgt_ref:  (1, TM)  int32 target class ids
    w_ref:    (1, TM)  float32 per-row weights
    loss_ref: (1, TM)  float32 per-row weighted cross-entropy loss (0 for padded tail rows)
    """
    logits = pred_ref[...].astype(jnp.float32)                     # (TM, C)

    # Relayout so the tiny class axis sits on sublanes and rows on the 128-wide lane axis.
    # This is an XLU transpose (own VLIW slot) and hides under the HBM DMA of the next block;
    # computing directly in the lane-padded (TM, C) layout would inflate EUP/VPU work ~8-10x.
    lt = jnp.transpose(logits)                                     # (C, TM)
    c = lt.shape[0]

    # Numerically stable log-sum-exp over the class (sublane) axis.
    m = jnp.max(lt, axis=0, keepdims=True)                         # (1, TM)
    lse = m + jnp.log(jnp.sum(jnp.exp(lt - m), axis=0, keepdims=True))  # (1, TM)

    tgt = tgt_ref[...]                                             # (1, TM) int32
    w = w_ref[...]                                                 # (1, TM) f32

    # Gather the target logit via a one-hot select along the sublane (class) axis.
    # (C, 1) iota broadcasts against the (1, TM) targets -> no full (C, TM) int32 temp.
    # TODO(synk): out-of-range / negative target ids silently yield loss = lse; PyTorch's
    # CrossEntropyLoss would raise, and there is no ignore_index support.
    cls = jax.lax.broadcasted_iota(jnp.int32, (c, 1), 0)           # (C, 1)
    tgt_logit = jnp.sum(jnp.where(cls == tgt, lt, 0.0),
                        axis=0, keepdims=True)                     # (1, TM)

    loss = (lse - tgt_logit) * w                                   # (1, TM)

    # Mask the ragged tail: rows >= rows_total are pipeline padding with undefined logits.
    row0 = pl.program_id(0) * tile_rows
    col = row0 + jax.lax.broadcasted_iota(jnp.int32, loss.shape, 1)
    loss_ref[...] = jnp.where(col < rows_total, loss, 0.0)


def cross_entropy_loss_with_weights(predict, target, weights, *, tile_rows=16384):
    """predict: (B, N, C) float, target: (B, N) int, weights: (B, N) float -> scalar float32."""
    B, N, C = predict.shape
    M = B * N

    # Natural layouts only — no transpose / pad / stack of predict in HBM.
    # (B, N, C) -> (M, C) keeps the minor dim, so XLA treats it as a free reshape whenever
    # N is a multiple of the sublane tile (8).  predict keeps its dtype (bf16 stays bf16).
    pred2d = predict.reshape(M, C)
    tgt2d = target.reshape(1, M).astype(jnp.int32)      # no f32 round-trip of class ids
    w2d = weights.reshape(1, M).astype(jnp.float32)

    tm = _pick_tile(M, tile_rows)
    nblk = pl.cdiv(M, tm)
    m_pad = nblk * tm            # only the pallas-allocated output is padded (tail == 0)

    kernel = functools.partial(_ce_rows_kernel, rows_total=M, tile_rows=tm)

    loss_rows = pl.pallas_call(
        kernel,
        out_shape=jax.ShapeDtypeStruct((1, m_pad), jnp.float32),
        grid_spec=pltpu.PrefetchScalarGridSpec(
            num_scalar_prefetch=0,
            grid=(nblk,),
            in_specs=[
                pl.BlockSpec((tm, C), lambda i: (i, 0)),   # contiguous tm x C logits DMA
                pl.BlockSpec((1, tm), lambda i: (0, i)),   # int32 targets
                pl.BlockSpec((1, tm), lambda i: (0, i)),   # f32 weights
            ],
            out_specs=pl.BlockSpec((1, tm), lambda i: (0, i)),
        ),
        compiler_params=pltpu.CompilerParams(
            # Disjoint output blocks per step -> fully parallel axis (megacore on v7x).
            dimension_semantics=("parallel",),
            # The (tm, 13) f32 block lane-pads to 128 in VMEM; raise the scoped limit so the
            # double-buffered predict stream + in-kernel temporaries fit (48 MiB < 64 MiB
            # physical on v7x, well under 128 MiB on v5e/v6e).
            vmem_limit_bytes=48 * 1024 * 1024,
        ),
    )(pred2d, tgt2d, w2d)

    # Mean over the *true* row count (padded tail rows were masked to exactly 0).
    # NOTE: divides by B*N (unweighted mean of weighted losses), matching the PyTorch module.
    return jnp.sum(loss_rows) / M


def _reference(predict, target, weights):
    B, N, C = predict.shape
    logits = predict.reshape(B * N, C).astype(jnp.float32)
    tgt = target.reshape(-1).astype(jnp.int32)
    w = weights.reshape(-1).astype(jnp.float32)
    logp = jax.nn.log_softmax(logits, axis=-1)
    nll = -jnp.take_along_axis(logp, tgt[:, None], axis=-1)[:, 0]
    return jnp.mean(nll * w)


if __name__ == "__main__":
    NUM_CLASSES = 13  # S3DIS
    B, N, C = 2, 64, NUM_CLASSES

    key = jax.random.PRNGKey(0)
    k_pred, k_tgt, k_w = jax.random.split(key, 3)
    predict = jax.random.normal(k_pred, (B, N, C), dtype=jnp.float32)
    target = jax.random.randint(k_tgt, (B, N), 0, NUM_CLASSES, dtype=jnp.int32)
    weights = jax.random.uniform(k_w, (B, N), dtype=jnp.float32)

    loss = cross_entropy_loss_with_weights(predict, target, weights)
    loss = jax.block_until_ready(loss)

    ref = _reference(predict, target, weights)
    assert jnp.allclose(loss, ref, rtol=1e-5, atol=1e-5), (loss, ref)
    print("KERNEL_OK")
</pallas_src>

<mosaic_0001>
module attributes {stable_mosaic.version = 11 : i64} {
  func.func @_ce_rows_kernel(%arg0: i32, %arg1: memref<128x13xf32, #tpu.memory_space<vmem>>, %arg2: memref<1x128xi32, #tpu.memory_space<vmem>>, %arg3: memref<1x128xf32, #tpu.memory_space<vmem>>, %arg4: memref<1x128xf32, #tpu.memory_space<vmem>>) attributes {dimension_semantics = [#tpu.dimension_semantics<parallel>], iteration_bounds = array<i64: 1>, scalar_prefetch = 0 : i64, scratch_operands = 0 : i64, tpu.core_type = #tpu.core_type<tc>, window_params = [{transform_indices = @transform_0, window_bounds = array<i64: 128, 13>}, {transform_indices = @transform_1, window_bounds = array<i64: 1, 128>}, {transform_indices = @transform_2, window_bounds = array<i64: 1, 128>}, {transform_indices = @transform_3, window_bounds = array<i64: 1, 128>}]} {
    %c0 = arith.constant 0 : index
    %c0_0 = arith.constant 0 : index
    %0 = vector.load %arg1[%c0, %c0_0] : memref<128x13xf32, #tpu.memory_space<vmem>>, vector<128x13xf32>
    %1 = tpu.transpose %0, [1, 0] : vector<128x13xf32> -> vector<13x128xf32>
    %cst = arith.constant dense<0xFF800000> : vector<128xf32>
    %2 = vector.multi_reduction <maximumf>, %1, %cst [0] : vector<13x128xf32> to vector<128xf32>
    %3 = vector.shape_cast %2 : vector<128xf32> to vector<1x128xf32>
    %4 = vector.broadcast %3 : vector<1x128xf32> to vector<13x128xf32>
    %5 = arith.subf %1, %4 : vector<13x128xf32>
    %6 = math.exp %5 : vector<13x128xf32>
    %cst_1 = arith.constant dense<0.000000e+00> : vector<128xf32>
    %7 = vector.multi_reduction <add>, %6, %cst_1 [0] : vector<13x128xf32> to vector<128xf32>
    %8 = vector.shape_cast %7 : vector<128xf32> to vector<1x128xf32>
    %9 = math.log %8 : vector<1x128xf32>
    %10 = arith.addf %3, %9 : vector<1x128xf32>
    %c0_2 = arith.constant 0 : index
    %c0_3 = arith.constant 0 : index
    %11 = vector.load %arg2[%c0_2, %c0_3] : memref<1x128xi32, #tpu.memory_space<vmem>>, vector<1x128xi32>
    %c0_4 = arith.constant 0 : index
    %c0_5 = arith.constant 0 : index
    %12 = vector.load %arg3[%c0_4, %c0_5] : memref<1x128xf32, #tpu.memory_space<vmem>>, vector<1x128xf32>
    %13 = tpu.iota {dimensions = array<i32: 0>} : vector<13x1xi32>
    %14 = vector.broadcast %13 : vector<13x1xi32> to vector<13x128xi32>
    %15 = vector.broadcast %11 : vector<1x128xi32> to vector<13x128xi32>
    %16 = arith.cmpi eq, %14, %15 : vector<13x128xi32>
    %cst_6 = arith.constant 0.000000e+00 : f32
    %17 = vector.broadcast %cst_6 : f32 to vector<13x128xf32>
    %18 = arith.select %16, %1, %17 : vector<13x128xi1>, vector<13x128xf32>
    %cst_7 = arith.constant dense<0.000000e+00> : vector<128xf32>
    %19 = vector.multi_reduction <add>, %18, %cst_7 [0] : vector<13x128xf32> to vector<128xf32>
    %20 = vector.shape_cast %19 : vector<128xf32> to vector<1x128xf32>
    %21 = arith.subf %10, %20 : vector<1x128xf32>
    %22 = arith.mulf %21, %12 : vector<1x128xf32>
    %c128_i32 = arith.constant 128 : i32
    %23 = arith.muli %arg0, %c128_i32 : i32
    %24 = tpu.iota {dimensions = array<i32: 1>} : vector<1x128xi32>
    %25 = vector.broadcast %23 : i32 to vector<1x128xi32>
    %26 = arith.addi %25, %24 : vector<1x128xi32>
    %c128_i32_8 = arith.constant 128 : i32
    %27 = vector.broadcast %c128_i32_8 : i32 to vector<1x128xi32>
    %28 = arith.cmpi slt, %26, %27 : vector<1x128xi32>
    %cst_9 = arith.constant 0.000000e+00 : f32
    %29 = vector.broadcast %cst_9 : f32 to vector<1x128xf32>
    %30 = arith.select %28, %22, %29 : vector<1x128xi1>, vector<1x128xf32>
    %c0_10 = arith.constant 0 : index
    %c0_11 = arith.constant 0 : index
    %31 = vector.load %arg4[%c0_10, %c0_11] : memref<1x128xf32, #tpu.memory_space<vmem>>, vector<1x128xf32>
    tpu.vector_store %arg4[%c0_10, %c0_11], %30 {strides = array<i32>} : memref<1x128xf32, #tpu.memory_space<vmem>>, vector<1x128xf32>,
    return
  }
  func.func @transform_0(%arg0: i32) -> (i32, i32) {
    %c0_i32 = arith.constant 0 : i32
    %c0_i32_0 = arith.constant 0 : i32
    return %arg0, %c0_i32 : i32, i32
  }
  func.func @transform_1(%arg0: i32) -> (i32, i32) {
    %c0_i32 = arith.constant 0 : i32
    %c0_i32_0 = arith.constant 0 : i32
    return %c0_i32, %arg0 : i32, i32
  }
  func.func @transform_2(%arg0: i32) -> (i32, i32) {
    %c0_i32 = arith.constant 0 : i32
    %c0_i32_0 = arith.constant 0 : i32
    return %c0_i32, %arg0 : i32, i32
  }
  func.func @transform_3(%arg0: i32) -> (i32, i32) {
    %c0_i32 = arith.constant 0 : i32
    %c0_i32_0 = arith.constant 0 : i32
    return %c0_i32, %arg0 : i32, i32
  }
}

</mosaic_0001>

<bundles_post_ra>
// kernel: tpu_custom_call.1
= control target key start
LH: loop header
LB: loop body
LE: loop exit
PB: predicated region body
PF: predicated region fallthrough
CT: control target
= control target key end

     0   :  { %s245_s0 = inlined_call_operand.vmem [shape: f32[128,13], index: 0, kind: input, shape index: {}]   ;;  %s246_s1 = inlined_call_operand.vmem [shape: s32[1,128], index: 1, kind: input, shape index: {}]   ;;  %s247_s2 = inlined_call_operand.vmem [shape: f32[1,128], index: 2, kind: input, shape index: {}]   ;;  %s248_s3 = inlined_call_operand.hbm [shape: f32[1,128], index: 3, kind: output, shape index: {}]  }
   0x1   :  { %v15_v0 = vld [vmem:[%s245_s0] sm:$0xff]  ;;  %v16_v1 = vld [vmem:[%s245_s0 + $0x8] sm:$0xff] }
   0x2   :  { %31 = vxpose.xlu0.b32.start [1/16] (narrow) %v15_v0, 16 }
   0x6   :  { %32 = vxpose.xlu0.b32.cont [2/16] (narrow) %v16_v1, 16 }
   0x7   :  { %8 = vsyncpa [#allocation3], 0  ;;  %v17_v2 = vld [vmem:[%s245_s0 + $0x10] sm:$0xff]  ;;  %v18_v3 = vld [vmem:[%s245_s0 + $0x18] sm:$0xff]  ;;  %vm63_vm0 = vcmask 1044480   ;;  %v91_v30 = vlaneseq  ;;  %s164_s19 = smov [#allocation2]  }
   0x8   :  { %v19_v4 = vld [vmem:[%s245_s0 + $0x20] sm:$0xff]  ;;  %v20_v5 = vld [vmem:[%s245_s0 + $0x28] sm:$0xff]  ;;  %v21_v6 = vld [vmem:[%s245_s0 + $0x30] sm:$0xff]  ;;  %s126_s20 = sshll.u32 %s164_s19, 4  ;;  %s127_s20 = int_to_ptr.vmem [resolvable:$true] %s126_s20 }
   0x9   :  { %v22_v7 = vld [vmem:[%s245_s0 + $0x38] sm:$0xff]  ;;  %v23_v8 = vld [vmem:[%s245_s0 + $0x40] sm:$0xff]  ;;  %v24_v9 = vld [vmem:[%s245_s0 + $0x48] sm:$0xff]  ;;  %v92_v31 = vshrl.u32 %v91_v30, 7  ;;  %s142_s21 = scalar_lea.vmem %s127_s20, 16  ;;  %s146_s22 = scalar_lea.vmem %s127_s20, 32 }
   0xa   :  { %33 = vxpose.xlu0.b32.cont [3/16] (narrow) %v17_v2, 16  ;;  %v25_v10 = vld [vmem:[%s245_s0 + $0x50] sm:$0xff]  ;;  %v26_v11 = vld [vmem:[%s245_s0 + $0x58] sm:$0xff]  ;;  %v27_v12 = vld [vmem:[%s245_s0 + $0x60] sm:$0xff]  ;;  %p143_p0 = scmp.ne.s32.totalorder %s127_s20, %s142_s21  ;;  %p147_p1 = scmp.lt.s32.totalorder %s127_s20, %s127_s20 }
   0xb   :  { %v28_v13 = vld [vmem:[%s245_s0 + $0x68] sm:$0xff]  ;;  %v29_v14 = vld [vmem:[%s245_s0 + $0x70] sm:$0xff]  ;;  %v30_v15 = vld [vmem:[%s245_s0 + $0x78] sm:$0xff]  ;;  %v93_v32 = vadd.s32 8, %v92_v31  ;;  %p148_p2 = scmp.lt.s32.totalorder %s146_s22, %s142_s21 }
   0xc   :  { %v134_v33 = vld [vmem:[%s246_s1] ss:$0 sm:$0xff] }
   0xd   :  { %vm99_vm1 = vcmp.eq.s32.totalorder %v93_v32, %v134_v33  ;;  %vm98_vm2 = vcmp.eq.s32.totalorder %v92_v31, %v134_v33  ;;  %v90_v57 = vld [vmem:[%s247_s2] sm:$0x1]  ;;  %p149_p3 = por %p148_p2, %p147_p1 }
   0xe   :  { %34 = vxpose.xlu0.b32.cont [4/16] (narrow) %v18_v3, 16 }
   0xf   :  { %p150_p4 = pnand %p149_p3, %p143_p0 }
  0x12   :  { %35 = vxpose.xlu0.b32.cont [5/16] (narrow) %v19_v4, 16 }
  0x16   :  { %36 = vxpose.xlu0.b32.cont [6/16] (narrow) %v20_v5, 16 }
  0x1a   :  { %37 = vxpose.xlu0.b32.cont [7/16] (narrow) %v21_v6, 16 }
  0x1e   :  { %38 = vxpose.xlu0.b32.cont [8/16] (narrow) %v22_v7, 16 }
  0x22   :  { %39 = vxpose.xlu0.b32.cont [9/16] (narrow) %v23_v8, 16 }
  0x26   :  { %40 = vxpose.xlu0.b32.cont [10/16] (narrow) %v24_v9, 16 }
  0x2a   :  { %41 = vxpose.xlu0.b32.cont [11/16] (narrow) %v25_v10, 16 }
  0x2e   :  { %42 = vxpose.xlu0.b32.cont [12/16] (narrow) %v26_v11, 16 }
  0x32   :  { %43 = vxpose.xlu0.b32.cont [13/16] (narrow) %v27_v12, 16 }
  0x36   :  { %44 = vxpose.xlu0.b32.cont [14/16] (narrow) %v28_v13, 16 }
  0x3a   :  { %45 = vxpose.xlu0.b32.cont [15/16] (narrow) %v29_v14, 16 }
  0x3e   :  { %46 = vxpose.xlu0.b32.end [16/16] (narrow) %v30_v15, 16 }
  0x7e   :  { %v47_v16 = vpop.trf.xlu0 }
  0x7f   :  { %v100_v42 = vsel %vm98_vm2, %v47_v16, 0.0 }
  0x82   :  { %v48_v17 = vpop.trf.xlu0 }
  0x83   :  { %v64_v18 = vsel %vm63_vm0, %v48_v17, -inf  ;;  %v101_v38 = vsel %vm99_vm1, %v48_v17, 0.0 }
  0x84   :  { %v65_v19 = vmax.f32 %v47_v16, %v64_v18  ;;  %v102_v40 = vsel %vm63_vm0, %v101_v38, 0.0 }
  0x85   :  { %v103_v44 = vadd.f32 %v102_v40, %v100_v42 }
  0x86   :  { %v66_v20 = vrot.slane %v65_v19, 4 }
  0x87   :  { %v104_v47 = vrot.slane %v103_v44, 4 }
  0x88   :  { %v67_v21 = vmax.f32 %v65_v19, %v66_v20 }
  0x89   :  { %v105_v49 = vadd.f32 %v104_v47, %v103_v44 }
  0x8a   :  { %v68_v22 = vrot.slane %v67_v21, 2 }
  0x8b   :  { %v106_v50 = vrot.slane %v105_v49, 2 }
  0x8c   :  { %v69_v23 = vmax.f32 %v67_v21, %v68_v22 }
  0x8d   :  { %v107_v51 = vadd.f32 %v106_v50, %v105_v49 }
  0x8e   :  { %v70_v24 = vrot.slane %v69_v23, 1 }
  0x8f   :  { %v108_v52 = vrot.slane %v107_v51, 1 }
  0x90   :  { %v71_v25 = vmax.f32 %v69_v23, %v70_v24 }
  0x91   :  { %v109_v56 = vadd.f32 %v108_v52, %v107_v51 }
  0x92   :  { %v72_v26 = vsub.f32 %v47_v16, %v71_v25  ;;  %v73_v27 = vsub.f32 %v48_v17, %v71_v25 }
  0x94   :  { %v74_v28 = vmul.f32 1.442695, %v72_v26  ;;  %v76_v29 = vmul.f32 1.442695, %v73_v27 }
  0x96   :  { %136 = vpow2.f32 %v74_v28 }
  0x97   :  { %138 = vpow2.f32 %v76_v29 }
  0xa3   :  { %v137_v34 = vpop.eup %136 }
  0xa4   :  { %v139_v35 = vpop.eup %138 }
  0xa5   :  { %v78_v36 = vsel %vm63_vm0, %v139_v35, 0.0 }
  0xa6   :  { %v79_v37 = vadd.f32 %v137_v34, %v78_v36 }
  0xa8   :  { %v80_v39 = vrot.slane %v79_v37, 4 }
  0xaa   :  { %v81_v41 = vadd.f32 %v80_v39, %v79_v37 }
  0xac   :  { %v82_v43 = vrot.slane %v81_v41, 2 }
  0xae   :  { %v83_v45 = vadd.f32 %v82_v43, %v81_v41 }
  0xb0   :  { %v84_v46 = vrot.slane %v83_v45, 1 }
  0xb2   :  { %v85_v48 = vadd.f32 %v84_v46, %v83_v45 }
  0xb4   :  { %140 = vlog2.f32 %v85_v48 }
  0xc1   :  { %v141_v53 = vpop.eup %140 }
  0xc2   :  { %v87_v54 = vmul.f32 0.6931472, %v141_v53 }
  0xc4   :  { %v88_v55 = vadd.f32 %v87_v54, %v71_v25 }
  0xc6   :  { %v110_v58 = vsub.f32 %v88_v55, %v109_v56 }
  0xc8   :  { %v111_v59 = vmul.f32 %v110_v58, %v90_v57 }
  0xca   :  { %119 = vst [vmem:[#allocation2] sm:$0x1] %v111_v59 }
  0xcb   :  { %153 = shalt.err (!%p150_p4)
}
  0xcc   :  { %129 = dma.vmem_to_hbm [thread:$0]  %s127_s20, 16, %s248_s3, [#allocation3]  }
  0xcd   :  { %162 = dma.done.wait [#allocation3], 16  }
  0xce   :  { %163 = vsyncadd [#allocation3], 4294967280 }
  0xcf   :  { %133 = vsyncpa [#allocation3], 1 }

</bundles_post_ra>
